<compile_context>
chip_gen: v5e
topology: v5e:2x2
jax: 0.10.0
libtpu: 0.0.40
codegen_flags: <defaults>
</compile_context>

<pallas_src>
from functools import partial

import jax
import jax.numpy as jnp
from jax.experimental import pallas as pl
from jax.experimental.pallas import tpu as pltpu

# Small demo sizes (B=batch, T=max_time, D=dim)
B, T, D = 2, 8, 32


def _bahdanau_kernel(pq_ref, v_ref, mem_ref, out_ref, *, compute_dtype):
    """One (batch-tile, time-tile) step of Bahdanau alignment.

    pq_ref  : (TB, D)      processed query = q @ Wq^T  (f32, precomputed in wrapper)
    v_ref   : (1, D)       v weight                    (f32)
    mem_ref : (TB, D, TT)  processed_inputs tile, D on sublanes, T on lanes (stream dtype)
    out_ref : (TB, TT)     alignment energies tile (lane-dense over T)
    """
    pq = pq_ref[...].astype(compute_dtype)                       # (TB, D)
    mem = mem_ref[...].astype(compute_dtype)                     # (TB, D, TT)
    e = jnp.tanh(pq[:, :, None] + mem)                           # EUP tanh dominates
    # score[b, t] = sum_d v[d] * e[b, d, t]  -- sublane reduce over D, f32 accumulation.
    v = v_ref[...].astype(jnp.float32)                           # (1, D)
    scores = jnp.sum(e.astype(jnp.float32) * v[:, :, None], axis=1)   # (TB, TT)
    out_ref[...] = scores.astype(out_ref.dtype)


def _device_kind():
    try:
        return jax.devices()[0].device_kind.lower()
    except Exception:
        return ""


def bahdanau_attention_forward(query, processed_inputs, params, *,
                               stream_dtype=jnp.bfloat16):
    """Pallas implementation of BahdanauAttention.forward.

    query:            (B, dim) or (B, 1, dim)
    processed_inputs: (B, T, dim)
    returns alignment energies of shape (B, T), float32.
    """
    if query.ndim == 3:                      # (B, 1, dim) -> (B, dim)
        query = query[:, 0, :]
    b, t, d = processed_inputs.shape

    wq = jnp.asarray(params["wq"], jnp.float32)          # (D, D) Linear(dim, dim).weight
    v = jnp.asarray(params["v"], jnp.float32)            # (1, D) Linear(dim, 1).weight

    # pq hoisted out of the kernel: a tiny (B,D)x(D,D) GEMM amortized over the whole
    # T sweep.  Removes the Wq VMEM residency and the grid-order constraint.
    pq = query.astype(jnp.float32) @ wq.T                # (B, D)

    # Stream the encoder memory as bf16 in (B, D, T) layout (T lane-dense, D on sublanes).
    # In a real decoder this cast/transpose should be produced ONCE per utterance at the
    # encoder output, not per decode step.
    # TODO(synk): keep (B, T, D) blocks (skip the transpose) when D is a multiple of 128.
    mem = jnp.swapaxes(processed_inputs, 1, 2).astype(stream_dtype)   # (B, D, T)

    # Per-generation VMEM budget for the double-buffered mem stream + scoped limit.
    kind = _device_kind()
    if ("v5" in kind) or ("v6" in kind):
        budget_bytes, vmem_limit = 64 << 20, 96 << 20    # 128 MiB physical VMEM
    else:                                                # v7x: 64 MiB per TC (and unknown)
        budget_bytes, vmem_limit = 36 << 20, 48 << 20
    # bf16 math only where the VPU/EUP support it; v5e (and older) stay f32-compute.
    compute_dtype = (jnp.bfloat16
                     if (stream_dtype == jnp.bfloat16 and ("v6" in kind or "v7" in kind))
                     else jnp.float32)

    # Tile selection.  tile_b modest so the batch grid axis has extent > 1 for large B;
    # tile_t = largest 128-multiple such that the double-buffered mem block fits the budget.
    tile_b = min(b, 8)
    itemsize = jnp.dtype(stream_dtype).itemsize
    per_t_col_bytes = 2 * tile_b * d * itemsize          # double-buffered bytes per T column
    max_tile_t = max(128, (budget_bytes // per_t_col_bytes) // 128 * 128)
    tile_t = t if t <= max_tile_t else max_tile_t        # full-extent block or 128-multiple
    # TODO(synk): if profiling shows the mem DMA still exposed at small tiles, add
    #             pipeline_mode=pl.Buffered(3) on the mem BlockSpec (re-budget for 3 bufs).

    grid = (pl.cdiv(b, tile_b), pl.cdiv(t, tile_t))

    return pl.pallas_call(
        partial(_bahdanau_kernel, compute_dtype=compute_dtype),
        out_shape=jax.ShapeDtypeStruct((b, t), jnp.float32),
        grid=grid,
        in_specs=[
            pl.BlockSpec((tile_b, d),         lambda bi, ti: (bi, 0)),   # pq
            pl.BlockSpec((1, d),              lambda bi, ti: (0, 0)),    # v
            pl.BlockSpec((tile_b, d, tile_t), lambda bi, ti: (bi, 0, ti)),  # mem (B,D,T)
        ],
        out_specs=pl.BlockSpec((tile_b, tile_t), lambda bi, ti: (bi, ti)),
        compiler_params=pltpu.CompilerParams(
            dimension_semantics=("parallel", "parallel"),
            vmem_limit_bytes=vmem_limit,
        ),
    )(pq, v, mem)


def _reference(query, processed_inputs, params):
    """Pure-JAX reference mirroring the PyTorch semantics (f32)."""
    if query.ndim == 3:
        query = query[:, 0, :]
    pq = query @ params["wq"].T                                 # (B, D)
    e = jnp.tanh(pq[:, None, :] + processed_inputs)             # (B, T, D)
    return jnp.einsum("btd,d->bt", e, params["v"][0])           # (B, T)


if __name__ == "__main__":
    key = jax.random.PRNGKey(0)
    ks = jax.random.split(key, 4)

    params = {
        "wq": 0.1 * jax.random.normal(ks[0], (D, D), jnp.float32),  # nn.Linear(dim, dim, bias=False)
        "v":  0.1 * jax.random.normal(ks[1], (1, D), jnp.float32),  # nn.Linear(dim, 1,  bias=False)
    }
    query = jax.random.normal(ks[2], (B, D), jnp.float32)
    processed_inputs = jax.random.normal(ks[3], (B, T, D), jnp.float32)

    ref_align = _reference(query, processed_inputs, params)

    # Perf path: bf16 streaming of the (B, T, D) memory (loose tolerance vs f32 reference).
    align_bf16 = bahdanau_attention_forward(query, processed_inputs, params)
    jax.block_until_ready(align_bf16)
    assert align_bf16.shape == (B, T)
    assert jnp.allclose(align_bf16, ref_align, atol=3e-2, rtol=3e-2)

    # Exact path: f32 streaming (tight tolerance), also exercises the (B, 1, dim) query form.
    align_f32 = bahdanau_attention_forward(query[:, None, :], processed_inputs, params,
                                           stream_dtype=jnp.float32)
    jax.block_until_ready(align_f32)
    assert align_f32.shape == (B, T)
    assert jnp.allclose(align_f32, ref_align, atol=1e-5, rtol=1e-5)

    print("KERNEL_OK")
</pallas_src>

<mosaic_0001>
module attributes {stable_mosaic.version = 11 : i64} {
  func.func @_bahdanau_kernel(%arg0: i32, %arg1: i32, %arg2: memref<2x32xf32, #tpu.memory_space<vmem>>, %arg3: memref<1x32xf32, #tpu.memory_space<vmem>>, %arg4: memref<2x32x8xbf16, #tpu.memory_space<vmem>>, %arg5: memref<2x8xf32, #tpu.memory_space<vmem>>) attributes {dimension_semantics = [#tpu.dimension_semantics<parallel>, #tpu.dimension_semantics<parallel>], iteration_bounds = array<i64: 1, 1>, scalar_prefetch = 0 : i64, scratch_operands = 0 : i64, tpu.core_type = #tpu.core_type<tc>, window_params = [{transform_indices = @transform_0, window_bounds = array<i64: 2, 32>}, {pipeline_mode = #tpu.pipeline_mode<synchronous>, transform_indices = @transform_1, window_bounds = array<i64: 1, 32>}, {transform_indices = @transform_2, window_bounds = array<i64: 2, 32, 8>}, {transform_indices = @transform_3, window_bounds = array<i64: 2, 8>}]} {
    %c0 = arith.constant 0 : index
    %c0_0 = arith.constant 0 : index
    %0 = vector.load %arg2[%c0, %c0_0] : memref<2x32xf32, #tpu.memory_space<vmem>>, vector<2x32xf32>
    %c0_1 = arith.constant 0 : index
    %c0_2 = arith.constant 0 : index
    %c0_3 = arith.constant 0 : index
    %1 = vector.load %arg4[%c0_1, %c0_2, %c0_3] : memref<2x32x8xbf16, #tpu.memory_space<vmem>>, vector<2x32x8xbf16>
    %2 = arith.extf %1 : vector<2x32x8xbf16> to vector<2x32x8xf32>
    %3 = vector.shape_cast %0 : vector<2x32xf32> to vector<2x32x1xf32>
    %4 = vector.broadcast %3 : vector<2x32x1xf32> to vector<2x32x8xf32>
    %5 = arith.addf %4, %2 : vector<2x32x8xf32>
    %6 = math.tanh %5 : vector<2x32x8xf32>
    %c0_4 = arith.constant 0 : index
    %c0_5 = arith.constant 0 : index
    %7 = vector.load %arg3[%c0_4, %c0_5] : memref<1x32xf32, #tpu.memory_space<vmem>>, vector<1x32xf32>
    %8 = vector.shape_cast %7 : vector<1x32xf32> to vector<1x32x1xf32>
    %9 = vector.broadcast %8 : vector<1x32x1xf32> to vector<2x32x8xf32>
    %10 = arith.mulf %6, %9 : vector<2x32x8xf32>
    %cst = arith.constant dense<0.000000e+00> : vector<2x8xf32>
    %11 = vector.multi_reduction <add>, %10, %cst [1] : vector<2x32x8xf32> to vector<2x8xf32>
    %c0_6 = arith.constant 0 : index
    %c0_7 = arith.constant 0 : index
    %12 = vector.load %arg5[%c0_6, %c0_7] : memref<2x8xf32, #tpu.memory_space<vmem>>, vector<2x8xf32>
    tpu.vector_store %arg5[%c0_6, %c0_7], %11 {strides = array<i32>} : memref<2x8xf32, #tpu.memory_space<vmem>>, vector<2x8xf32>,
    return
  }
  func.func @transform_0(%arg0: i32, %arg1: i32) -> (i32, i32) {
    %c0_i32 = arith.constant 0 : i32
    %c0_i32_0 = arith.constant 0 : i32
    return %arg0, %c0_i32 : i32, i32
  }
  func.func @transform_1(%arg0: i32, %arg1: i32) -> (i32, i32) {
    %c0_i32 = arith.constant 0 : i32
    %c0_i32_0 = arith.constant 0 : i32
    %c0_i32_1 = arith.constant 0 : i32
    return %c0_i32, %c0_i32_0 : i32, i32
  }
  func.func @transform_2(%arg0: i32, %arg1: i32) -> (i32, i32, i32) {
    %c0_i32 = arith.constant 0 : i32
    %c0_i32_0 = arith.constant 0 : i32
    return %arg0, %c0_i32, %arg1 : i32, i32, i32
  }
  func.func @transform_3(%arg0: i32, %arg1: i32) -> (i32, i32) {
    %c0_i32 = arith.constant 0 : i32
    return %arg0, %arg1 : i32, i32
  }
}

</mosaic_0001>

<bundles_post_ra>
// kernel: tpu_custom_call.1
= control target key start
LH: loop header
LB: loop body
LE: loop exit
PB: predicated region body
PF: predicated region fallthrough
CT: control target
= control target key end

     0   :  { %v33_v0 = vlaneseq  ;;  %s307_s0 = inlined_call_operand.vmem [shape: f32[2,32], index: 0, kind: input, shape index: {}]   ;;  %s308_s1 = inlined_call_operand.vmem [shape: f32[1,32], index: 1, kind: input, shape index: {}]   ;;  %s309_s2 = inlined_call_operand.vmem [shape: bf16[2,32,8], index: 2, kind: input, shape index: {}]   ;;  %s310_s3 = inlined_call_operand.hbm [shape: f32[2,8], index: 3, kind: output, shape index: {}]  }
   0x1   :  { %8 = vsyncpa [#allocation3], 0  ;;  %v15_v3 = vld [vmem:[%s307_s0] sm:$0x3]  ;;  %v199_v16 = vld [vmem:[%s309_s2 + $0x10] sm:$0xff]   ;;  %vm132_vm0 = vcmask 64512  }
   0x2   :  { %v34_v1 = vshrl.u32 %v33_v0, 7  ;;  %v57_v4 = vperm.slane %v15_v3, 1  ;;  %v32_v5 = vperm.slane %v15_v3, 0  ;;  %v214_v8 = vld [vmem:[%s308_s1] ss:$0 sm:$0xff]  ;;  %v198_v18 = vld [vmem:[%s309_s2 + $0x8] sm:$0xff]   ;;  %v193_v19 = vunpack.c.h.bf16 %v199_v16 }
   0x3   :  { %v183_v13 = vld [vmem:[%s309_s2] sm:$0xff]   ;;  %v200_v20 = vld [vmem:[%s309_s2 + $0x18] sm:$0xff]   ;;  %v192_v22 = vunpack.c.l.bf16 %v199_v16  ;;  %v188_v24 = vunpack.c.l.bf16 %v198_v18  ;;  %v189_v34 = vunpack.c.h.bf16 %v198_v18  ;;  %s257_s2 = smov [#allocation2]   ;;  %s173_s25 = sshll.u32 %s310_s3, 4  ;;  %vm161_vm1 = vcmask 1041409   ;;  %s174_s25 = int_to_ptr.hbm [resolvable:$true] %s173_s25 }
   0x4   :  { %204 = vset.pattern.permute.xlu1 %v34_v1  ;;  %202 = vset.pattern.permute.xlu0 %v34_v1  ;;  %v47_v2 = vadd.s32 16, %v34_v1  ;;  %v41_v6 = vadd.s32 8, %v34_v1  ;;  %v53_v7 = vadd.s32 24, %v34_v1  ;;  %v185_v15 = vunpack.c.h.bf16 %v183_v13  ;;  %s171_s22 = sshll.u32 %s257_s2, 4  ;;  %s172_s22 = int_to_ptr.vmem [resolvable:$true] %s171_s22 }
   0x5   :  { %v184_v17 = vunpack.c.l.bf16 %v183_v13  ;;  %v196_v26 = vunpack.c.l.bf16 %v200_v20  ;;  %v197_v33 = vunpack.c.h.bf16 %v200_v20  ;;  %vm164_vm2 = vcmask 58368  }
   0x6   :  { %206 = vset.pattern.permute.xlu2 %v47_v2 }
   0xc   :  { %62 = vperm.xlu1 %204, %v57_v4   ;;  %37 = vperm.xlu0 %202, %v32_v5  }
   0xe   :  { %49 = vperm.xlu2 %206, %v32_v5  }
  0x14   :  { %205 = vset.pattern.permute.xlu1 %v41_v6  ;;  %203 = vset.pattern.permute.xlu0 %v41_v6 }
  0x16   :  { %74 = vperm.xlu2 %206, %v57_v4  }
  0x1c   :  { %68 = vperm.xlu1 %205, %v57_v4   ;;  %43 = vperm.xlu0 %203, %v32_v5  }
  0x1e   :  { %208 = vset.pattern.permute.xlu2 %v53_v7 }
  0x24   :  { %207 = vset.pattern.permute.xlu1 %v53_v7  ;;  %209 = vset.pattern.permute.xlu0 %v34_v1 }
  0x26   :  { %80 = vperm.xlu2 %208, %v57_v4  }
  0x2c   :  { %55 = vperm.xlu1 %207, %v32_v5   ;;  %104 = vperm.xlu0 %209, %v214_v8  }
  0x2e   :  { %211 = vset.pattern.permute.xlu2 %v47_v2 }
  0x34   :  { %210 = vset.pattern.permute.xlu1 %v41_v6  ;;  %213 = vset.pattern.permute.xlu0 %v53_v7 }
  0x36   :  { %116 = vperm.xlu2 %211, %v214_v8  }
  0x3c   :  { %110 = vperm.xlu1 %210, %v214_v8  }
  0x44   :  { %212 = vset.pattern.permute.xlu1 %v53_v7 }
  0x4c   :  { %122 = vperm.xlu1 %212, %v214_v8  }
  0x68   :  { %v50_v10 = vpop.permute.xlu2 %49 }
  0x69   :  { %v84_v30 = vadd.f32 %v188_v24, %v50_v10 }
  0x70   :  { %v75_v14 = vpop.permute.xlu2 %74 }
  0x71   :  { %v88_v31 = vadd.f32 %v196_v26, %v75_v14 }
  0x7e   :  { %v63_v9 = vpop.permute.xlu1 %62  ;;  %v38_v11 = vpop.permute.xlu0 %37 }
  0x7f   :  { %v82_v25 = vadd.f32 %v184_v17, %v38_v11  ;;  %v86_v29 = vadd.f32 %v192_v22, %v63_v9 }
  0x80   :  { %v81_v32 = vpop.permute.xlu2 %80 }
  0x81   :  { %v89_v38 = vadd.f32 %v197_v33, %v81_v32 }
  0x8e   :  { %v69_v12 = vpop.permute.xlu1 %68  ;;  %v44_v21 = vpop.permute.xlu0 %43 }
  0x8f   :  { %v83_v23 = vadd.f32 %v185_v15, %v44_v21  ;;  %v87_v27 = vadd.f32 %v193_v19, %v69_v12 }
  0x90   :  { %v117_v49 = vpop.permute.xlu2 %116 }
  0x91   :  { %215 = vtanh.f32 %v83_v23 }
  0x92   :  { %217 = vtanh.f32 %v82_v25 }
  0x93   :  { %219 = vtanh.f32 %v87_v27 }
  0x94   :  { %221 = vtanh.f32 %v86_v29 }
  0x95   :  { %223 = vtanh.f32 %v84_v30 }
  0x96   :  { %225 = vtanh.f32 %v88_v31 }
  0x97   :  { %v216_v35 = vpop.eup %215  ;;  %227 = vtanh.f32 %v89_v38 }
  0x98   :  { %v218_v37 = vpop.eup %217 }
  0x99   :  { %v220_v39 = vpop.eup %219 }
  0x9a   :  { %v222_v44 = vpop.eup %221 }
  0x9b   :  { %v224_v45 = vpop.eup %223 }
  0x9c   :  { %v226_v48 = vpop.eup %225  ;;  %v126_v52 = vmul.f32 %v224_v45, %v117_v49 }
  0x9d   :  { %v130_v53 = vmul.f32 %v226_v48, %v117_v49  ;;  %v228_v58 = vpop.eup %227 }
  0x9e   :  { %v56_v28 = vpop.permute.xlu1 %55  ;;  %v105_v41 = vpop.permute.xlu0 %104  ;;  %v136_v61 = vsel %vm132_vm0, %v126_v52, 0.0 }
  0x9f   :  { %v85_v40 = vadd.f32 %v189_v34, %v56_v28  ;;  %v124_v46 = vmul.f32 %v218_v37, %v105_v41  ;;  %v128_v47 = vmul.f32 %v222_v44, %v105_v41  ;;  %v149_v62 = vsel %vm132_vm0, %v130_v53, 0.0 }
  0xa1   :  { %229 = vtanh.f32 %v85_v40  ;;  %v133_v54 = vsel %vm132_vm0, %v124_v46, 0.0  ;;  %v146_v55 = vsel %vm132_vm0, %v128_v47, 0.0 }
  0xa7   :  { %v230_v59 = vpop.eup %229 }
  0xae   :  { %v111_v36 = vpop.permute.xlu1 %110 }
  0xaf   :  { %v125_v42 = vmul.f32 %v216_v35, %v111_v36  ;;  %v129_v43 = vmul.f32 %v220_v39, %v111_v36 }
  0xb1   :  { %v134_v50 = vsel %vm132_vm0, %v125_v42, 0.0  ;;  %v147_v51 = vsel %vm132_vm0, %v129_v43, 0.0 }
  0xb2   :  { %v135_v56 = vadd.f32 %v134_v50, %v133_v54  ;;  %v148_v57 = vadd.f32 %v147_v51, %v146_v55 }
  0xb4   :  { %v137_v1 = vadd.f32 %v136_v61, %v135_v56  ;;  %v150_v2 = vadd.f32 %v149_v62, %v148_v57 }
  0xbe   :  { %v123_v60 = vpop.permute.xlu1 %122 }
  0xbf   :  { %v127_v63 = vmul.f32 %v230_v59, %v123_v60  ;;  %v131_v0 = vmul.f32 %v228_v58, %v123_v60 }
  0xc1   :  { %v138_v3 = vsel %vm132_vm0, %v127_v63, 0.0  ;;  %v151_v4 = vsel %vm132_vm0, %v131_v0, 0.0 }
  0xc2   :  { %v139_v5 = vadd.f32 %v138_v3, %v137_v1  ;;  %v152_v6 = vadd.f32 %v151_v4, %v150_v2 }
  0xc4   :  { %v140_v7 = vrot.slane %v139_v5, 4  ;;  %v153_v8 = vrot.slane %v152_v6, 4 }
  0xc6   :  { %v141_v9 = vadd.f32 %v140_v7, %v139_v5  ;;  %v154_v10 = vadd.f32 %v153_v8, %v152_v6 }
  0xc8   :  { %v142_v11 = vrot.slane %v141_v9, 2  ;;  %v155_v12 = vrot.slane %v154_v10, 2 }
  0xca   :  { %v143_v13 = vadd.f32 %v142_v11, %v141_v9  ;;  %v156_v14 = vadd.f32 %v155_v12, %v154_v10 }
  0xcc   :  { %v144_v15 = vrot.slane %v143_v13, 1  ;;  %v157_v16 = vrot.slane %v156_v14, 1 }
  0xce   :  { %v145_v17 = vadd.f32 %v144_v15, %v143_v13  ;;  %v158_v18 = vadd.f32 %v157_v16, %v156_v14 }
  0xd0   :  { %v162_v19 = vsel %vm161_vm1, %v158_v18, %v145_v17 }
  0xd1   :  { %165 = vst.msk [vmem:[#allocation2] sm:$0x3] %vm164_vm2, %v162_v19 }
  0xd2   :  { %176 = dma.vmem_to_hbm [thread:$0]  %s172_s22, 32, %s174_s25, [#allocation3]  }
  0xd3   :  { %255 = dma.done.wait [#allocation3], 32  }
  0xd4   :  { %256 = vsyncadd [#allocation3], 4294967264 }
  0xd5   :  { %181 = vsyncpa [#allocation3], 1 }

</bundles_post_ra>
